<compile_context>
chip_gen: v5e
topology: v5e:2x2
jax: 0.10.0
libtpu: 0.0.40
codegen_flags: <defaults>
</compile_context>

<pallas_src>
import math
import functools

import jax
import jax.numpy as jnp
from jax.experimental import pallas as pl
from jax.experimental.pallas import tpu as pltpu


def _round_up(x, m):
    return ((x + m - 1) // m) * m


def _gather_block_kernel(idx_ref, pe_ref, out_ref, *, block_rows, max_len):
    # idx_ref: (n_pad,) int32 scalar-prefetch ref in SMEM (whole index vector)
    # pe_ref:  (max_len, d_model) f32, full table resident in VMEM
    # out_ref: (block_rows, d_model) f32 output tile for this grid step
    base = pl.program_id(0) * block_rows

    def copy_row(r, carry):
        raw = idx_ref[base + r]
        # torch.where(x < max_len, x, 0); additionally clamp negatives so the
        # VMEM read can never go out of bounds (PyTorch would raise there).
        in_range = jnp.logical_and(raw >= 0, raw < max_len)
        safe = jnp.where(in_range, raw, 0)
        out_ref[pl.ds(r, 1), :] = pe_ref[pl.ds(safe, 1), :]
        return carry

    jax.lax.fori_loop(0, block_rows, copy_row, 0, unroll=8)


def positional_embedding_lookup(indices, pe, max_len, *, block_rows_cap=256):
    """indices: (N,) int -> (N, d_model) f32 gathered rows of pe."""
    n = int(indices.shape[0])
    table_rows, d_model = pe.shape
    assert table_rows == max_len, "pe table rows must equal max_len"

    idx = indices.astype(jnp.int32)

    # Dense output tiles: multiple of 8 rows (sublane), full d_model on lanes.
    block_rows = min(block_rows_cap, _round_up(n, 8))
    n_pad = _round_up(n, block_rows)
    if n_pad != n:
        idx = jnp.pad(idx, (0, n_pad - n))  # padded slots read row 0 (discarded)
    num_blocks = n_pad // block_rows

    kernel = functools.partial(
        _gather_block_kernel, block_rows=block_rows, max_len=max_len)

    grid_spec = pltpu.PrefetchScalarGridSpec(
        num_scalar_prefetch=1,
        grid=(num_blocks,),
        in_specs=[
            # Full pe table, constant block index -> DMA hoisted, stays in VMEM.
            pl.BlockSpec((max_len, d_model), lambda i, idx_ref: (0, 0)),
        ],
        out_specs=pl.BlockSpec((block_rows, d_model),
                               lambda i, idx_ref: (i, 0)),
    )

    pe_bytes = max_len * d_model * 4
    out_block_bytes = block_rows * d_model * 4
    needed = 2 * pe_bytes + 2 * out_block_bytes + 4 * n_pad + (1 << 20)
    vmem_limit = max(4 << 20, min(needed, 64 << 20))

    out = pl.pallas_call(
        kernel,
        out_shape=jax.ShapeDtypeStruct((n_pad, d_model), pe.dtype),
        grid_spec=grid_spec,
        compiler_params=pltpu.CompilerParams(
            dimension_semantics=("parallel",),   # independent tiles -> 2-TC on v7x
            vmem_limit_bytes=vmem_limit,
        ),
        cost_estimate=pl.CostEstimate(
            flops=0,
            transcendentals=0,
            bytes_accessed=pe_bytes + n_pad * d_model * 4 + 4 * n_pad,
        ),
    )(idx, pe)

    return out[:n] if n_pad != n else out


def make_sinusoidal_pe(d_model, max_len):
    """Deterministic sinusoidal table, identical to the PyTorch __init__."""
    position = jnp.arange(max_len, dtype=jnp.float32)[:, None]          # (L, 1)
    div_term = jnp.exp(
        jnp.arange(0, d_model, 2, dtype=jnp.float32)
        * -(math.log(10000.0) / d_model))                               # (D/2,)
    ang = position * div_term                                           # (L, D/2)
    # Interleave: even columns = sin, odd columns = cos.
    pe = jnp.stack([jnp.sin(ang), jnp.cos(ang)], axis=-1).reshape(max_len, d_model)
    return pe.astype(jnp.float32)


class PositionalEmbeddingPallas:
    def __init__(self, d_model, max_len=512):
        self.max_len = max_len
        self.pe = make_sinusoidal_pe(d_model, max_len)

    def __call__(self, x):
        # x: 1-D tensor of position indices (int). Cast mirrors `.int()`.
        idx = x.astype(jnp.int32)
        return positional_embedding_lookup(idx, self.pe, self.max_len)


if __name__ == "__main__":
    key = jax.random.PRNGKey(0)

    # --- Case 1: small shapes matching the module defaults scaled down -------
    d_model, max_len, seq = 32, 64, 8
    k1, k2 = jax.random.split(key)
    # Some indices >= max_len to exercise the clamp path.
    x1 = jax.random.randint(k1, (seq,), 0, 2 * max_len, dtype=jnp.int32)

    mod1 = PositionalEmbeddingPallas(d_model, max_len=max_len)
    out1 = jax.block_until_ready(mod1(x1))
    ref1 = mod1.pe[jnp.where(x1 < max_len, x1, 0).astype(jnp.int32)]
    assert out1.shape == (seq, d_model) and out1.dtype == jnp.float32
    assert jnp.array_equal(out1, ref1), "case 1 mismatch vs reference"

    # --- Case 2: multiple grid blocks + padding + lane-dense d_model ---------
    d_model2, max_len2, seq2 = 128, 512, 300
    x2 = jax.random.randint(k2, (seq2,), 0, 2 * max_len2, dtype=jnp.int32)

    mod2 = PositionalEmbeddingPallas(d_model2, max_len=max_len2)
    out2 = jax.block_until_ready(mod2(x2))
    ref2 = mod2.pe[jnp.where(x2 < max_len2, x2, 0).astype(jnp.int32)]
    assert out2.shape == (seq2, d_model2) and out2.dtype == jnp.float32
    assert jnp.array_equal(out2, ref2), "case 2 mismatch vs reference"

    print("KERNEL_OK")
</pallas_src>

<mosaic_0001>
module attributes {stable_mosaic.version = 11 : i64} {
  func.func @_gather_block_kernel(%arg0: i32, %arg1: memref<8xi32, #tpu.memory_space<smem>>, %arg2: memref<64x32xf32, #tpu.memory_space<vmem>>, %arg3: memref<8x32xf32, #tpu.memory_space<vmem>>) attributes {dimension_semantics = [#tpu.dimension_semantics<parallel>], iteration_bounds = array<i64: 1>, scalar_prefetch = 1 : i64, scratch_operands = 0 : i64, tpu.core_type = #tpu.core_type<tc>, window_params = [{pipeline_mode = #tpu.pipeline_mode<synchronous>, transform_indices = @transform_0, window_bounds = array<i64: 64, 32>}, {transform_indices = @transform_1, window_bounds = array<i64: 8, 32>}]} {
    %c8_i32 = arith.constant 8 : i32
    %0 = arith.muli %arg0, %c8_i32 : i32
    %c0_i32 = arith.constant 0 : i32
    %1 = arith.addi %0, %c0_i32 : i32
    %2 = arith.index_cast %1 : i32 to index
    %3 = memref.load %arg1[%2] : memref<8xi32, #tpu.memory_space<smem>>
    %c0_i32_0 = arith.constant 0 : i32
    %4 = arith.cmpi sge, %3, %c0_i32_0 : i32
    %c64_i32 = arith.constant 64 : i32
    %5 = arith.cmpi slt, %3, %c64_i32 : i32
    %6 = arith.andi %4, %5 : i1
    %c0_i32_1 = arith.constant 0 : i32
    %7 = arith.select %6, %3, %c0_i32_1 : i32
    %8 = arith.index_cast %7 : i32 to index
    %c0 = arith.constant 0 : index
    %9 = vector.load %arg2[%8, %c0] : memref<64x32xf32, #tpu.memory_space<vmem>>, vector<1x32xf32>
    %10 = arith.index_cast %c0_i32 : i32 to index
    %c0_2 = arith.constant 0 : index
    %11 = vector.load %arg3[%10, %c0_2] : memref<8x32xf32, #tpu.memory_space<vmem>>, vector<1x32xf32>
    tpu.vector_store %arg3[%10, %c0_2], %9 {strides = array<i32>} : memref<8x32xf32, #tpu.memory_space<vmem>>, vector<1x32xf32>,
    %c1_i32 = arith.constant 1 : i32
    %12 = arith.addi %0, %c1_i32 : i32
    %13 = arith.index_cast %12 : i32 to index
    %14 = memref.load %arg1[%13] : memref<8xi32, #tpu.memory_space<smem>>
    %c0_i32_3 = arith.constant 0 : i32
    %15 = arith.cmpi sge, %14, %c0_i32_3 : i32
    %c64_i32_4 = arith.constant 64 : i32
    %16 = arith.cmpi slt, %14, %c64_i32_4 : i32
    %17 = arith.andi %15, %16 : i1
    %c0_i32_5 = arith.constant 0 : i32
    %18 = arith.select %17, %14, %c0_i32_5 : i32
    %19 = arith.index_cast %18 : i32 to index
    %c0_6 = arith.constant 0 : index
    %20 = vector.load %arg2[%19, %c0_6] : memref<64x32xf32, #tpu.memory_space<vmem>>, vector<1x32xf32>
    %21 = arith.index_cast %c1_i32 : i32 to index
    %c0_7 = arith.constant 0 : index
    %22 = vector.load %arg3[%21, %c0_7] : memref<8x32xf32, #tpu.memory_space<vmem>>, vector<1x32xf32>
    tpu.vector_store %arg3[%21, %c0_7], %20 {strides = array<i32>} : memref<8x32xf32, #tpu.memory_space<vmem>>, vector<1x32xf32>,
    %c2_i32 = arith.constant 2 : i32
    %23 = arith.addi %0, %c2_i32 : i32
    %24 = arith.index_cast %23 : i32 to index
    %25 = memref.load %arg1[%24] : memref<8xi32, #tpu.memory_space<smem>>
    %c0_i32_8 = arith.constant 0 : i32
    %26 = arith.cmpi sge, %25, %c0_i32_8 : i32
    %c64_i32_9 = arith.constant 64 : i32
    %27 = arith.cmpi slt, %25, %c64_i32_9 : i32
    %28 = arith.andi %26, %27 : i1
    %c0_i32_10 = arith.constant 0 : i32
    %29 = arith.select %28, %25, %c0_i32_10 : i32
    %30 = arith.index_cast %29 : i32 to index
    %c0_11 = arith.constant 0 : index
    %31 = vector.load %arg2[%30, %c0_11] : memref<64x32xf32, #tpu.memory_space<vmem>>, vector<1x32xf32>
    %32 = arith.index_cast %c2_i32 : i32 to index
    %c0_12 = arith.constant 0 : index
    %33 = vector.load %arg3[%32, %c0_12] : memref<8x32xf32, #tpu.memory_space<vmem>>, vector<1x32xf32>
    tpu.vector_store %arg3[%32, %c0_12], %31 {strides = array<i32>} : memref<8x32xf32, #tpu.memory_space<vmem>>, vector<1x32xf32>,
    %c3_i32 = arith.constant 3 : i32
    %34 = arith.addi %0, %c3_i32 : i32
    %35 = arith.index_cast %34 : i32 to index
    %36 = memref.load %arg1[%35] : memref<8xi32, #tpu.memory_space<smem>>
    %c0_i32_13 = arith.constant 0 : i32
    %37 = arith.cmpi sge, %36, %c0_i32_13 : i32
    %c64_i32_14 = arith.constant 64 : i32
    %38 = arith.cmpi slt, %36, %c64_i32_14 : i32
    %39 = arith.andi %37, %38 : i1
    %c0_i32_15 = arith.constant 0 : i32
    %40 = arith.select %39, %36, %c0_i32_15 : i32
    %41 = arith.index_cast %40 : i32 to index
    %c0_16 = arith.constant 0 : index
    %42 = vector.load %arg2[%41, %c0_16] : memref<64x32xf32, #tpu.memory_space<vmem>>, vector<1x32xf32>
    %43 = arith.index_cast %c3_i32 : i32 to index
    %c0_17 = arith.constant 0 : index
    %44 = vector.load %arg3[%43, %c0_17] : memref<8x32xf32, #tpu.memory_space<vmem>>, vector<1x32xf32>
    tpu.vector_store %arg3[%43, %c0_17], %42 {strides = array<i32>} : memref<8x32xf32, #tpu.memory_space<vmem>>, vector<1x32xf32>,
    %c4_i32 = arith.constant 4 : i32
    %45 = arith.addi %0, %c4_i32 : i32
    %46 = arith.index_cast %45 : i32 to index
    %47 = memref.load %arg1[%46] : memref<8xi32, #tpu.memory_space<smem>>
    %c0_i32_18 = arith.constant 0 : i32
    %48 = arith.cmpi sge, %47, %c0_i32_18 : i32
    %c64_i32_19 = arith.constant 64 : i32
    %49 = arith.cmpi slt, %47, %c64_i32_19 : i32
    %50 = arith.andi %48, %49 : i1
    %c0_i32_20 = arith.constant 0 : i32
    %51 = arith.select %50, %47, %c0_i32_20 : i32
    %52 = arith.index_cast %51 : i32 to index
    %c0_21 = arith.constant 0 : index
    %53 = vector.load %arg2[%52, %c0_21] : memref<64x32xf32, #tpu.memory_space<vmem>>, vector<1x32xf32>
    %54 = arith.index_cast %c4_i32 : i32 to index
    %c0_22 = arith.constant 0 : index
    %55 = vector.load %arg3[%54, %c0_22] : memref<8x32xf32, #tpu.memory_space<vmem>>, vector<1x32xf32>
    tpu.vector_store %arg3[%54, %c0_22], %53 {strides = array<i32>} : memref<8x32xf32, #tpu.memory_space<vmem>>, vector<1x32xf32>,
    %c5_i32 = arith.constant 5 : i32
    %56 = arith.addi %0, %c5_i32 : i32
    %57 = arith.index_cast %56 : i32 to index
    %58 = memref.load %arg1[%57] : memref<8xi32, #tpu.memory_space<smem>>
    %c0_i32_23 = arith.constant 0 : i32
    %59 = arith.cmpi sge, %58, %c0_i32_23 : i32
    %c64_i32_24 = arith.constant 64 : i32
    %60 = arith.cmpi slt, %58, %c64_i32_24 : i32
    %61 = arith.andi %59, %60 : i1
    %c0_i32_25 = arith.constant 0 : i32
    %62 = arith.select %61, %58, %c0_i32_25 : i32
    %63 = arith.index_cast %62 : i32 to index
    %c0_26 = arith.constant 0 : index
    %64 = vector.load %arg2[%63, %c0_26] : memref<64x32xf32, #tpu.memory_space<vmem>>, vector<1x32xf32>
    %65 = arith.index_cast %c5_i32 : i32 to index
    %c0_27 = arith.constant 0 : index
    %66 = vector.load %arg3[%65, %c0_27] : memref<8x32xf32, #tpu.memory_space<vmem>>, vector<1x32xf32>
    tpu.vector_store %arg3[%65, %c0_27], %64 {strides = array<i32>} : memref<8x32xf32, #tpu.memory_space<vmem>>, vector<1x32xf32>,
    %c6_i32 = arith.constant 6 : i32
    %67 = arith.addi %0, %c6_i32 : i32
    %68 = arith.index_cast %67 : i32 to index
    %69 = memref.load %arg1[%68] : memref<8xi32, #tpu.memory_space<smem>>
    %c0_i32_28 = arith.constant 0 : i32
    %70 = arith.cmpi sge, %69, %c0_i32_28 : i32
    %c64_i32_29 = arith.constant 64 : i32
    %71 = arith.cmpi slt, %69, %c64_i32_29 : i32
    %72 = arith.andi %70, %71 : i1
    %c0_i32_30 = arith.constant 0 : i32
    %73 = arith.select %72, %69, %c0_i32_30 : i32
    %74 = arith.index_cast %73 : i32 to index
    %c0_31 = arith.constant 0 : index
    %75 = vector.load %arg2[%74, %c0_31] : memref<64x32xf32, #tpu.memory_space<vmem>>, vector<1x32xf32>
    %76 = arith.index_cast %c6_i32 : i32 to index
    %c0_32 = arith.constant 0 : index
    %77 = vector.load %arg3[%76, %c0_32] : memref<8x32xf32, #tpu.memory_space<vmem>>, vector<1x32xf32>
    tpu.vector_store %arg3[%76, %c0_32], %75 {strides = array<i32>} : memref<8x32xf32, #tpu.memory_space<vmem>>, vector<1x32xf32>,
    %c7_i32 = arith.constant 7 : i32
    %78 = arith.addi %0, %c7_i32 : i32
    %79 = arith.index_cast %78 : i32 to index
    %80 = memref.load %arg1[%79] : memref<8xi32, #tpu.memory_space<smem>>
    %c0_i32_33 = arith.constant 0 : i32
    %81 = arith.cmpi sge, %80, %c0_i32_33 : i32
    %c64_i32_34 = arith.constant 64 : i32
    %82 = arith.cmpi slt, %80, %c64_i32_34 : i32
    %83 = arith.andi %81, %82 : i1
    %c0_i32_35 = arith.constant 0 : i32
    %84 = arith.select %83, %80, %c0_i32_35 : i32
    %85 = arith.index_cast %84 : i32 to index
    %c0_36 = arith.constant 0 : index
    %86 = vector.load %arg2[%85, %c0_36] : memref<64x32xf32, #tpu.memory_space<vmem>>, vector<1x32xf32>
    %87 = arith.index_cast %c7_i32 : i32 to index
    %c0_37 = arith.constant 0 : index
    %88 = vector.load %arg3[%87, %c0_37] : memref<8x32xf32, #tpu.memory_space<vmem>>, vector<1x32xf32>
    tpu.vector_store %arg3[%87, %c0_37], %86 {strides = array<i32>} : memref<8x32xf32, #tpu.memory_space<vmem>>, vector<1x32xf32>,
    %c8_i32_38 = arith.constant 8 : i32
    return
  }
  func.func @transform_0(%arg0: i32, %arg1: memref<8xi32, #tpu.memory_space<smem>>) -> (i32, i32) {
    %c0_i32 = arith.constant 0 : i32
    %c0_i32_0 = arith.constant 0 : i32
    %c0_i32_1 = arith.constant 0 : i32
    return %c0_i32, %c0_i32_0 : i32, i32
  }
  func.func @transform_1(%arg0: i32, %arg1: memref<8xi32, #tpu.memory_space<smem>>) -> (i32, i32) {
    %c0_i32 = arith.constant 0 : i32
    %c0_i32_0 = arith.constant 0 : i32
    return %arg0, %c0_i32 : i32, i32
  }
}

</mosaic_0001>

<bundles_post_ra>
// kernel: tpu_custom_call.1
= control target key start
LH: loop header
LB: loop body
LE: loop exit
PB: predicated region body
PF: predicated region fallthrough
CT: control target
= control target key end

     0   :  { %s180_s12 = smov [#allocation3]   ;;  %s250_s0 = inlined_call_operand.vmem [shape: s32[8], index: 0, kind: input, shape index: {}]   ;;  %s251_s1 = inlined_call_operand.vmem [shape: f32[64,32], index: 1, kind: input, shape index: {}]   ;;  %s252_s2 = inlined_call_operand.hbm [shape: f32[8,32], index: 2, kind: output, shape index: {}]  }
   0x1   :  { %s8_s11 = sshll.u32 %s250_s0, 4  ;;  %s9_s11 = int_to_ptr.vmem [resolvable:$true] %s8_s11 }
   0x2   :  { %11 = dma.vmem_to_smem %s9_s11, 16, %s180_s12, [#allocation2] }
   0x3   :  { %176 = dma.done.wait [#allocation2], 16 }
   0x4   :  { %177 = vsyncadd [#allocation2], 4294967280 }
   0x5   :  { %14 = sfence }
   0x6   :  { %s19_s13 = sld [smem:[#allocation3]] }
   0x7   :  { %15 = vsyncpa [#allocation5], 0  ;;  %s124_s14 = sld [smem:[#allocation3 + $0x1]]  ;;  %vm27_vm0 = vcmask 253952   ;;  %s181_s10 = smov [#allocation4]  }
   0x8   :  { %s126_s15 = sld [smem:[#allocation3 + $0x2]]  ;;  %s104_s11 = sshll.u32 %s181_s10, 4  ;;  %s105_s11 = int_to_ptr.vmem [resolvable:$true] %s104_s11 }
   0x9   :  { %s200_s16 = sld [smem:[#allocation3 + $0x3]] }
   0xa   :  { %s202_s17 = sld [smem:[#allocation3 + $0x4]] }
   0xb   :  { %s204_s18 = sld [smem:[#allocation3 + $0x5]] }
   0xc   :  { %p20_p0 = scmp.ge.s32.totalorder %s19_s13, 0  ;;  %p21_p1 = scmp.lt.s32.totalorder %s19_s13, 64 }
   0xd   :  { %p31_p2 = scmp.ge.s32.totalorder %s124_s14, 0  ;;  %p32_p3 = scmp.lt.s32.totalorder %s124_s14, 64 }
   0xe   :  { %p22_p4 = pnand %p21_p1, %p20_p0  ;;  %p41_p5 = scmp.ge.s32.totalorder %s126_s15, 0 }
   0xf   :  { %p33_p6 = pnand %p32_p3, %p31_p2  ;;  %p42_p7 = scmp.lt.s32.totalorder %s126_s15, 64 }
  0x10   :  { %s254_s13 = smov (%p22_p4, %s19_s13), 0  ;;  %p51_p9 = scmp.ge.s32.totalorder %s200_s16, 0 }
  0x11   :  { %s256_s14 = smov (%p33_p6, %s124_s14), 0  ;;  %s25_s20 = scalar_lea.vmem %s251_s1, %s254_s13 }
  0x12   :  { %p43_p8 = pnand %p42_p7, %p41_p5  ;;  %v26_v0 = vld [vmem:[%s25_s20] sm:$0x1]  ;;  %s36_s23 = scalar_lea.vmem %s251_s1, %s256_s14 }
  0x13   :  { %28 = vst.msk [vmem:[#allocation4] sm:$0x1] %vm27_vm0, %v26_v0  ;;  %v37_v1 = vld [vmem:[%s36_s23] sm:$0x1]  ;;  %p52_p10 = scmp.lt.s32.totalorder %s200_s16, 64  ;;  %p61_p11 = scmp.ge.s32.totalorder %s202_s17, 0 }
  0x14   :  { %s258_s15 = smov (%p43_p8, %s126_s15), 0  ;;  %38 = vst.msk [vmem:[#allocation4 + $0x1] sm:$0x1] %vm27_vm0, %v37_v1  ;;  %p62_p12 = scmp.lt.s32.totalorder %s202_s17, 64 }
  0x15   :  { %s46_s26 = scalar_lea.vmem %s251_s1, %s258_s15  ;;  %p53_p13 = pnand %p52_p10, %p51_p9 }
  0x16   :  { %v47_v2 = vld [vmem:[%s46_s26] sm:$0x1]  ;;  %p71_p0 = scmp.ge.s32.totalorder %s204_s18, 0  ;;  %p63_p1 = pnand %p62_p12, %p61_p11 }
  0x17   :  { %48 = vst.msk [vmem:[#allocation4 + $0x2] sm:$0x1] %vm27_vm0, %v47_v2  ;;  %p72_p2 = scmp.lt.s32.totalorder %s204_s18, 64  ;;  %s260_s16 = smov (%p53_p13, %s200_s16), 0 }
  0x18   :  { %s262_s17 = smov (%p63_p1, %s202_s17), 0  ;;  %s56_s29 = scalar_lea.vmem %s251_s1, %s260_s16 }
  0x19   :  { %p73_p3 = pnand %p72_p2, %p71_p0  ;;  %v57_v3 = vld [vmem:[%s56_s29] sm:$0x1]  ;;  %s66_s4 = scalar_lea.vmem %s251_s1, %s262_s17 }
  0x1a   :  { %s134_s5 = sld [smem:[#allocation3 + $0x6]]  ;;  %58 = vst.msk [vmem:[#allocation4 + $0x3] sm:$0x1] %vm27_vm0, %v57_v3  ;;  %v67_v4 = vld [vmem:[%s66_s4] sm:$0x1]  ;;  %s106_s17 = sshll.u32 %s252_s2, 4  ;;  %s107_s17 = int_to_ptr.hbm [resolvable:$true] %s106_s17 }
  0x1b   :  { %s264_s18 = smov (%p73_p3, %s204_s18), 0  ;;  %68 = vst.msk [vmem:[#allocation4 + $0x4] sm:$0x1] %vm27_vm0, %v67_v4  ;;  %s136_s6 = sld [smem:[#allocation3 + $0x7]] }
  0x1c   :  { %s76_s9 = scalar_lea.vmem %s251_s1, %s264_s18 }
  0x1d   :  { %v77_v5 = vld [vmem:[%s76_s9] sm:$0x1] }
  0x1e   :  { %78 = vst.msk [vmem:[#allocation4 + $0x5] sm:$0x1] %vm27_vm0, %v77_v5 }
  0x20   :  { %p81_p4 = scmp.ge.s32.totalorder %s134_s5, 0  ;;  %p82_p5 = scmp.lt.s32.totalorder %s134_s5, 64 }
  0x21   :  { %p91_p7 = scmp.ge.s32.totalorder %s136_s6, 0  ;;  %p92_p8 = scmp.lt.s32.totalorder %s136_s6, 64 }
  0x22   :  { %p83_p6 = pnand %p82_p5, %p81_p4 }
  0x23   :  { %p93_p9 = pnand %p92_p8, %p91_p7 }
  0x24   :  { %s266_s5 = smov (%p83_p6, %s134_s5), 0 }
  0x25   :  { %s86_s14 = scalar_lea.vmem %s251_s1, %s266_s5  ;;  %s268_s6 = smov (%p93_p9, %s136_s6), 0 }
  0x26   :  { %v87_v6 = vld [vmem:[%s86_s14] sm:$0x1]  ;;  %s96_s19 = scalar_lea.vmem %s251_s1, %s268_s6 }
  0x27   :  { %88 = vst.msk [vmem:[#allocation4 + $0x6] sm:$0x1] %vm27_vm0, %v87_v6  ;;  %v97_v7 = vld [vmem:[%s96_s19] sm:$0x1] }
  0x28   :  { %98 = vst.msk [vmem:[#allocation4 + $0x7] sm:$0x1] %vm27_vm0, %v97_v7 }
  0x29   :  { %109 = dma.vmem_to_hbm [thread:$0]  %s105_s11, 128, %s107_s17, [#allocation5]  }
  0x2a   :  { %178 = dma.done.wait [#allocation5], 128  }
  0x2b   :  { %179 = vsyncadd [#allocation5], 4294967168 }
  0x2c   :  { %114 = vsyncpa [#allocation5], 1 }

</bundles_post_ra>
